<compile_context>
chip_gen: v7x
topology: tpu7x:2x2x1
jax: 0.10.0
libtpu: 0.0.40
codegen_flags: <defaults>
</compile_context>

<pallas_src>
import math
from functools import partial

import jax
import jax.numpy as jnp
from jax.experimental import pallas as pl
from jax.experimental.pallas import tpu as pltpu

# ------------------------- model hyper-parameters ---------------------------
D_MIN, D_MAX, INTERVAL, GAMMA = 0.0, 2.0, 0.1, 10.0
D = int(round(abs(D_MAX - D_MIN) / INTERVAL))   # 20 RBF centers
F = 16                                          # SchNet feature width
BLOCK_B = 128                                   # molecules per grid step (lanes)


# ------------------------------- kernel -------------------------------------
def _schnet_row0_kernel(coords_ref, p_ref, out_ref, *, n_centers, d_min,
                        interval, gamma):
    # coords_ref: (3, N, BM)  -- x/y/z planes, atoms on sublanes, molecules on lanes
    # p_ref:      (D + 1,)    -- SMEM: folded RBF weights + folded scalar bias
    # out_ref:    (1, BM)
    x = coords_ref[0]                                   # (N, BM)
    y = coords_ref[1]
    z = coords_ref[2]

    # distances from atom 0 to every atom (direct differences -> no cancellation)
    dx = x - x[0:1, :]
    dy = y - y[0:1, :]
    dz = z - z[0:1, :]
    dist = jnp.sqrt(dx * dx + dy * dy + dz * dz)        # (N, BM)

    # weighted RBF sum: sum_d exp(-gamma*(d - mu_d)^2) * w_eff[d]
    acc = jnp.zeros_like(dist)
    for k in range(n_centers):                          # unrolled, D = 20
        mu_k = d_min + k * interval                     # compile-time constant
        t = dist - mu_k
        acc = acc + jnp.exp(-gamma * t * t) * p_ref[k]  # SMEM scalar weight

    score = jnp.sum(acc, axis=0, keepdims=True)         # (1, BM) sum over atoms
    out_ref[...] = score + p_ref[n_centers]             # + folded bias


# ------------------------------ wrapper --------------------------------------
def schnet_classifier_forward(coords, params, *, block_b=BLOCK_B):
    """SchNetClassifier.forward(coordinates) -> (B, 1)."""
    B, N, _ = coords.shape
    f32 = jnp.float32

    # ---- fold the parameter-only (data-independent) path on the host ----
    e = params["atom_emb"].astype(f32)                        # (F,) shared atom emb
    xv = e @ params["w_int"] + params["b_int"]                # Interaction.W(e)
    s = params["w_q"] * xv                                    # (F,)
    w_eff = params["w_cf"] @ s                                # (D,)
    mu = jnp.asarray([D_MIN + k * INTERVAL for k in range(D)], f32)
    rbf0 = jnp.exp(-GAMMA * mu * mu)                          # RBF of d == 0
    bias_eff = (params["b_q"] + params["w_q"] @ e
                + (N - 1) * (s @ params["b_cf"])
                - rbf0 @ w_eff)                               # removes masked diagonal
    p = jnp.concatenate([w_eff, bias_eff.reshape(1)]).astype(f32)   # (D + 1,)

    # ---- molecules along lanes, atoms along sublanes ----
    bm = block_b
    n_blocks = -(-B // bm)
    b_pad = n_blocks * bm
    ct = jnp.transpose(coords.astype(f32), (2, 1, 0))         # (3, N, B)
    if b_pad != B:
        ct = jnp.pad(ct, ((0, 0), (0, 0), (0, b_pad - B)))

    kernel = partial(_schnet_row0_kernel, n_centers=D, d_min=D_MIN,
                     interval=INTERVAL, gamma=GAMMA)
    out = pl.pallas_call(
        kernel,
        out_shape=jax.ShapeDtypeStruct((1, b_pad), f32),
        grid=(n_blocks,),
        in_specs=[
            pl.BlockSpec((3, N, bm), lambda i: (0, 0, i)),        # coordinates
            pl.BlockSpec(memory_space=pltpu.MemorySpace.SMEM),    # folded params
        ],
        out_specs=pl.BlockSpec((1, bm), lambda i: (0, i)),        # lane-dense store
        compiler_params=pltpu.CompilerParams(
            dimension_semantics=("parallel",)),
    )(ct, p)
    return out[0, :B].reshape(B, 1)


# ------------------------ pure-JAX reference (unfolded) ----------------------
def schnet_reference(coords, params):
    B, N, _ = coords.shape
    f32 = jnp.float32
    mu = jnp.asarray([D_MIN + k * INTERVAL for k in range(D)], f32)
    diff = coords[:, :, None, :] - coords[:, None, :, :]
    adj = jnp.sqrt(jnp.sum(diff * diff, axis=-1))                     # (B,N,N)
    rbf = jnp.exp(-GAMMA * (adj[..., None] - mu) ** 2)                # (B,N,N,D)
    w_conv = rbf @ params["w_cf"] + params["b_cf"]                    # (B,N,N,F)
    w_conv = w_conv * (1.0 - jnp.eye(N, dtype=f32))[None, :, :, None]
    atom_emb = jnp.broadcast_to(params["atom_emb"], (B, N, F))
    x = atom_emb @ params["w_int"] + params["b_int"]                  # (B,N,F)
    msg = jnp.einsum("bnmf,bmf->bnf", w_conv, x)
    v = (atom_emb + msg)[:, 0, :]
    return (v @ params["w_q"] + params["b_q"]).reshape(B, 1)


# --------------------- deterministic parameter init --------------------------
def init_params(key):
    ks = jax.random.split(key, 8)

    def xavier(k, fan_in, fan_out, shape, gain=1.0):
        bound = gain * math.sqrt(6.0 / (fan_in + fan_out))
        return jax.random.uniform(k, shape, jnp.float32, -bound, bound)

    def small(k, shape):
        return jax.random.uniform(k, shape, jnp.float32, -0.1, 0.1)

    return {
        "w_cf": xavier(ks[0], D, F, (D, F)),                  # CfConv.W : D -> F
        "b_cf": small(ks[1], (F,)),
        "w_int": xavier(ks[2], F, F, (F, F)),                 # Interaction.W : F -> F
        "b_int": small(ks[3], (F,)),
        "atom_emb": xavier(ks[4], 1, F, (F,), gain=1.414),    # (1,1,F) parameter
        "w_q": xavier(ks[5], F, 1, (F,)),                     # Q : F -> 1
        "b_q": small(ks[6], ()),
    }


# --------------------------------- main ---------------------------------------
if __name__ == "__main__":
    key = jax.random.PRNGKey(0)
    k_coords, k_params = jax.random.split(key)

    B, N_V = 2, 8
    coordinates = jax.random.normal(k_coords, (B, N_V, 3), dtype=jnp.float32)
    params = init_params(k_params)

    out = schnet_classifier_forward(coordinates, params)
    out = jax.block_until_ready(out)
    assert out.shape == (B, 1)

    ref = schnet_reference(coordinates, params)
    assert jnp.allclose(out, ref, rtol=1e-3, atol=1e-3), (out, ref)
    print("KERNEL_OK")
</pallas_src>

<mosaic_0001>
module attributes {stable_mosaic.version = 11 : i64} {
  func.func @_schnet_row0_kernel(%arg0: i32, %arg1: memref<3x8x128xf32, #tpu.memory_space<vmem>>, %arg2: memref<21xf32, #tpu.memory_space<smem>>, %arg3: memref<1x128xf32, #tpu.memory_space<vmem>>) attributes {dimension_semantics = [#tpu.dimension_semantics<parallel>], iteration_bounds = array<i64: 1>, scalar_prefetch = 0 : i64, scratch_operands = 0 : i64, tpu.core_type = #tpu.core_type<tc>, window_params = [{transform_indices = @transform_0, window_bounds = array<i64: 3, 8, 128>}, {transform_indices = @transform_1, window_bounds = array<i64: 21>}, {transform_indices = @transform_2, window_bounds = array<i64: 1, 128>}]} {
    %c0 = arith.constant 0 : index
    %c0_0 = arith.constant 0 : index
    %c0_1 = arith.constant 0 : index
    %0 = vector.load %arg1[%c0, %c0_0, %c0_1] : memref<3x8x128xf32, #tpu.memory_space<vmem>>, vector<1x8x128xf32>
    %1 = vector.shape_cast %0 : vector<1x8x128xf32> to vector<8x128xf32>
    %c1 = arith.constant 1 : index
    %c0_2 = arith.constant 0 : index
    %c0_3 = arith.constant 0 : index
    %2 = vector.load %arg1[%c1, %c0_2, %c0_3] : memref<3x8x128xf32, #tpu.memory_space<vmem>>, vector<1x8x128xf32>
    %3 = vector.shape_cast %2 : vector<1x8x128xf32> to vector<8x128xf32>
    %c2 = arith.constant 2 : index
    %c0_4 = arith.constant 0 : index
    %c0_5 = arith.constant 0 : index
    %4 = vector.load %arg1[%c2, %c0_4, %c0_5] : memref<3x8x128xf32, #tpu.memory_space<vmem>>, vector<1x8x128xf32>
    %5 = vector.shape_cast %4 : vector<1x8x128xf32> to vector<8x128xf32>
    %6 = vector.extract_strided_slice %1 {offsets = [0, 0], sizes = [1, 128], strides = [1, 1]} : vector<8x128xf32> to vector<1x128xf32>
    %7 = vector.broadcast %6 : vector<1x128xf32> to vector<8x128xf32>
    %8 = arith.subf %1, %7 : vector<8x128xf32>
    %9 = vector.extract_strided_slice %3 {offsets = [0, 0], sizes = [1, 128], strides = [1, 1]} : vector<8x128xf32> to vector<1x128xf32>
    %10 = vector.broadcast %9 : vector<1x128xf32> to vector<8x128xf32>
    %11 = arith.subf %3, %10 : vector<8x128xf32>
    %12 = vector.extract_strided_slice %5 {offsets = [0, 0], sizes = [1, 128], strides = [1, 1]} : vector<8x128xf32> to vector<1x128xf32>
    %13 = vector.broadcast %12 : vector<1x128xf32> to vector<8x128xf32>
    %14 = arith.subf %5, %13 : vector<8x128xf32>
    %15 = arith.mulf %8, %8 : vector<8x128xf32>
    %16 = arith.mulf %11, %11 : vector<8x128xf32>
    %17 = arith.addf %15, %16 : vector<8x128xf32>
    %18 = arith.mulf %14, %14 : vector<8x128xf32>
    %19 = arith.addf %17, %18 : vector<8x128xf32>
    %20 = math.sqrt %19 : vector<8x128xf32>
    %cst = arith.constant 0.000000e+00 : f32
    %21 = vector.broadcast %cst : f32 to vector<8x128xf32>
    %cst_6 = arith.constant 0.000000e+00 : f32
    %22 = vector.broadcast %cst_6 : f32 to vector<8x128xf32>
    %23 = arith.subf %20, %22 : vector<8x128xf32>
    %cst_7 = arith.constant -1.000000e+01 : f32
    %24 = vector.broadcast %cst_7 : f32 to vector<8x128xf32>
    %25 = arith.mulf %24, %23 : vector<8x128xf32>
    %26 = arith.mulf %25, %23 : vector<8x128xf32>
    %27 = math.exp %26 : vector<8x128xf32>
    %c0_8 = arith.constant 0 : index
    %28 = memref.load %arg2[%c0_8] : memref<21xf32, #tpu.memory_space<smem>>
    %29 = vector.broadcast %28 : f32 to vector<8x128xf32>
    %30 = arith.mulf %27, %29 : vector<8x128xf32>
    %31 = arith.addf %21, %30 : vector<8x128xf32>
    %cst_9 = arith.constant 1.000000e-01 : f32
    %32 = vector.broadcast %cst_9 : f32 to vector<8x128xf32>
    %33 = arith.subf %20, %32 : vector<8x128xf32>
    %cst_10 = arith.constant -1.000000e+01 : f32
    %34 = vector.broadcast %cst_10 : f32 to vector<8x128xf32>
    %35 = arith.mulf %34, %33 : vector<8x128xf32>
    %36 = arith.mulf %35, %33 : vector<8x128xf32>
    %37 = math.exp %36 : vector<8x128xf32>
    %c1_11 = arith.constant 1 : index
    %38 = memref.load %arg2[%c1_11] : memref<21xf32, #tpu.memory_space<smem>>
    %39 = vector.broadcast %38 : f32 to vector<8x128xf32>
    %40 = arith.mulf %37, %39 : vector<8x128xf32>
    %41 = arith.addf %31, %40 : vector<8x128xf32>
    %cst_12 = arith.constant 2.000000e-01 : f32
    %42 = vector.broadcast %cst_12 : f32 to vector<8x128xf32>
    %43 = arith.subf %20, %42 : vector<8x128xf32>
    %cst_13 = arith.constant -1.000000e+01 : f32
    %44 = vector.broadcast %cst_13 : f32 to vector<8x128xf32>
    %45 = arith.mulf %44, %43 : vector<8x128xf32>
    %46 = arith.mulf %45, %43 : vector<8x128xf32>
    %47 = math.exp %46 : vector<8x128xf32>
    %c2_14 = arith.constant 2 : index
    %48 = memref.load %arg2[%c2_14] : memref<21xf32, #tpu.memory_space<smem>>
    %49 = vector.broadcast %48 : f32 to vector<8x128xf32>
    %50 = arith.mulf %47, %49 : vector<8x128xf32>
    %51 = arith.addf %41, %50 : vector<8x128xf32>
    %cst_15 = arith.constant 3.000000e-01 : f32
    %52 = vector.broadcast %cst_15 : f32 to vector<8x128xf32>
    %53 = arith.subf %20, %52 : vector<8x128xf32>
    %cst_16 = arith.constant -1.000000e+01 : f32
    %54 = vector.broadcast %cst_16 : f32 to vector<8x128xf32>
    %55 = arith.mulf %54, %53 : vector<8x128xf32>
    %56 = arith.mulf %55, %53 : vector<8x128xf32>
    %57 = math.exp %56 : vector<8x128xf32>
    %c3 = arith.constant 3 : index
    %58 = memref.load %arg2[%c3] : memref<21xf32, #tpu.memory_space<smem>>
    %59 = vector.broadcast %58 : f32 to vector<8x128xf32>
    %60 = arith.mulf %57, %59 : vector<8x128xf32>
    %61 = arith.addf %51, %60 : vector<8x128xf32>
    %cst_17 = arith.constant 4.000000e-01 : f32
    %62 = vector.broadcast %cst_17 : f32 to vector<8x128xf32>
    %63 = arith.subf %20, %62 : vector<8x128xf32>
    %cst_18 = arith.constant -1.000000e+01 : f32
    %64 = vector.broadcast %cst_18 : f32 to vector<8x128xf32>
    %65 = arith.mulf %64, %63 : vector<8x128xf32>
    %66 = arith.mulf %65, %63 : vector<8x128xf32>
    %67 = math.exp %66 : vector<8x128xf32>
    %c4 = arith.constant 4 : index
    %68 = memref.load %arg2[%c4] : memref<21xf32, #tpu.memory_space<smem>>
    %69 = vector.broadcast %68 : f32 to vector<8x128xf32>
    %70 = arith.mulf %67, %69 : vector<8x128xf32>
    %71 = arith.addf %61, %70 : vector<8x128xf32>
    %cst_19 = arith.constant 5.000000e-01 : f32
    %72 = vector.broadcast %cst_19 : f32 to vector<8x128xf32>
    %73 = arith.subf %20, %72 : vector<8x128xf32>
    %cst_20 = arith.constant -1.000000e+01 : f32
    %74 = vector.broadcast %cst_20 : f32 to vector<8x128xf32>
    %75 = arith.mulf %74, %73 : vector<8x128xf32>
    %76 = arith.mulf %75, %73 : vector<8x128xf32>
    %77 = math.exp %76 : vector<8x128xf32>
    %c5 = arith.constant 5 : index
    %78 = memref.load %arg2[%c5] : memref<21xf32, #tpu.memory_space<smem>>
    %79 = vector.broadcast %78 : f32 to vector<8x128xf32>
    %80 = arith.mulf %77, %79 : vector<8x128xf32>
    %81 = arith.addf %71, %80 : vector<8x128xf32>
    %cst_21 = arith.constant 6.000000e-01 : f32
    %82 = vector.broadcast %cst_21 : f32 to vector<8x128xf32>
    %83 = arith.subf %20, %82 : vector<8x128xf32>
    %cst_22 = arith.constant -1.000000e+01 : f32
    %84 = vector.broadcast %cst_22 : f32 to vector<8x128xf32>
    %85 = arith.mulf %84, %83 : vector<8x128xf32>
    %86 = arith.mulf %85, %83 : vector<8x128xf32>
    %87 = math.exp %86 : vector<8x128xf32>
    %c6 = arith.constant 6 : index
    %88 = memref.load %arg2[%c6] : memref<21xf32, #tpu.memory_space<smem>>
    %89 = vector.broadcast %88 : f32 to vector<8x128xf32>
    %90 = arith.mulf %87, %89 : vector<8x128xf32>
    %91 = arith.addf %81, %90 : vector<8x128xf32>
    %cst_23 = arith.constant 0.699999988 : f32
    %92 = vector.broadcast %cst_23 : f32 to vector<8x128xf32>
    %93 = arith.subf %20, %92 : vector<8x128xf32>
    %cst_24 = arith.constant -1.000000e+01 : f32
    %94 = vector.broadcast %cst_24 : f32 to vector<8x128xf32>
    %95 = arith.mulf %94, %93 : vector<8x128xf32>
    %96 = arith.mulf %95, %93 : vector<8x128xf32>
    %97 = math.exp %96 : vector<8x128xf32>
    %c7 = arith.constant 7 : index
    %98 = memref.load %arg2[%c7] : memref<21xf32, #tpu.memory_space<smem>>
    %99 = vector.broadcast %98 : f32 to vector<8x128xf32>
    %100 = arith.mulf %97, %99 : vector<8x128xf32>
    %101 = arith.addf %91, %100 : vector<8x128xf32>
    %cst_25 = arith.constant 8.000000e-01 : f32
    %102 = vector.broadcast %cst_25 : f32 to vector<8x128xf32>
    %103 = arith.subf %20, %102 : vector<8x128xf32>
    %cst_26 = arith.constant -1.000000e+01 : f32
    %104 = vector.broadcast %cst_26 : f32 to vector<8x128xf32>
    %105 = arith.mulf %104, %103 : vector<8x128xf32>
    %106 = arith.mulf %105, %103 : vector<8x128xf32>
    %107 = math.exp %106 : vector<8x128xf32>
    %c8 = arith.constant 8 : index
    %108 = memref.load %arg2[%c8] : memref<21xf32, #tpu.memory_space<smem>>
    %109 = vector.broadcast %108 : f32 to vector<8x128xf32>
    %110 = arith.mulf %107, %109 : vector<8x128xf32>
    %111 = arith.addf %101, %110 : vector<8x128xf32>
    %cst_27 = arith.constant 0.899999976 : f32
    %112 = vector.broadcast %cst_27 : f32 to vector<8x128xf32>
    %113 = arith.subf %20, %112 : vector<8x128xf32>
    %cst_28 = arith.constant -1.000000e+01 : f32
    %114 = vector.broadcast %cst_28 : f32 to vector<8x128xf32>
    %115 = arith.mulf %114, %113 : vector<8x128xf32>
    %116 = arith.mulf %115, %113 : vector<8x128xf32>
    %117 = math.exp %116 : vector<8x128xf32>
    %c9 = arith.constant 9 : index
    %118 = memref.load %arg2[%c9] : memref<21xf32, #tpu.memory_space<smem>>
    %119 = vector.broadcast %118 : f32 to vector<8x128xf32>
    %120 = arith.mulf %117, %119 : vector<8x128xf32>
    %121 = arith.addf %111, %120 : vector<8x128xf32>
    %cst_29 = arith.constant 1.000000e+00 : f32
    %122 = vector.broadcast %cst_29 : f32 to vector<8x128xf32>
    %123 = arith.subf %20, %122 : vector<8x128xf32>
    %cst_30 = arith.constant -1.000000e+01 : f32
    %124 = vector.broadcast %cst_30 : f32 to vector<8x128xf32>
    %125 = arith.mulf %124, %123 : vector<8x128xf32>
    %126 = arith.mulf %125, %123 : vector<8x128xf32>
    %127 = math.exp %126 : vector<8x128xf32>
    %c10 = arith.constant 10 : index
    %128 = memref.load %arg2[%c10] : memref<21xf32, #tpu.memory_space<smem>>
    %129 = vector.broadcast %128 : f32 to vector<8x128xf32>
    %130 = arith.mulf %127, %129 : vector<8x128xf32>
    %131 = arith.addf %121, %130 : vector<8x128xf32>
    %cst_31 = arith.constant 1.100000e+00 : f32
    %132 = vector.broadcast %cst_31 : f32 to vector<8x128xf32>
    %133 = arith.subf %20, %132 : vector<8x128xf32>
    %cst_32 = arith.constant -1.000000e+01 : f32
    %134 = vector.broadcast %cst_32 : f32 to vector<8x128xf32>
    %135 = arith.mulf %134, %133 : vector<8x128xf32>
    %136 = arith.mulf %135, %133 : vector<8x128xf32>
    %137 = math.exp %136 : vector<8x128xf32>
    %c11 = arith.constant 11 : index
    %138 = memref.load %arg2[%c11] : memref<21xf32, #tpu.memory_space<smem>>
    %139 = vector.broadcast %138 : f32 to vector<8x128xf32>
    %140 = arith.mulf %137, %139 : vector<8x128xf32>
    %141 = arith.addf %131, %140 : vector<8x128xf32>
    %cst_33 = arith.constant 1.200000e+00 : f32
    %142 = vector.broadcast %cst_33 : f32 to vector<8x128xf32>
    %143 = arith.subf %20, %142 : vector<8x128xf32>
    %cst_34 = arith.constant -1.000000e+01 : f32
    %144 = vector.broadcast %cst_34 : f32 to vector<8x128xf32>
    %145 = arith.mulf %144, %143 : vector<8x128xf32>
    %146 = arith.mulf %145, %143 : vector<8x128xf32>
    %147 = math.exp %146 : vector<8x128xf32>
    %c12 = arith.constant 12 : index
    %148 = memref.load %arg2[%c12] : memref<21xf32, #tpu.memory_space<smem>>
    %149 = vector.broadcast %148 : f32 to vector<8x128xf32>
    %150 = arith.mulf %147, %149 : vector<8x128xf32>
    %151 = arith.addf %141, %150 : vector<8x128xf32>
    %cst_35 = arith.constant 1.300000e+00 : f32
    %152 = vector.broadcast %cst_35 : f32 to vector<8x128xf32>
    %153 = arith.subf %20, %152 : vector<8x128xf32>
    %cst_36 = arith.constant -1.000000e+01 : f32
    %154 = vector.broadcast %cst_36 : f32 to vector<8x128xf32>
    %155 = arith.mulf %154, %153 : vector<8x128xf32>
    %156 = arith.mulf %155, %153 : vector<8x128xf32>
    %157 = math.exp %156 : vector<8x128xf32>
    %c13 = arith.constant 13 : index
    %158 = memref.load %arg2[%c13] : memref<21xf32, #tpu.memory_space<smem>>
    %159 = vector.broadcast %158 : f32 to vector<8x128xf32>
    %160 = arith.mulf %157, %159 : vector<8x128xf32>
    %161 = arith.addf %151, %160 : vector<8x128xf32>
    %cst_37 = arith.constant 1.400000e+00 : f32
    %162 = vector.broadcast %cst_37 : f32 to vector<8x128xf32>
    %163 = arith.subf %20, %162 : vector<8x128xf32>
    %cst_38 = arith.constant -1.000000e+01 : f32
    %164 = vector.broadcast %cst_38 : f32 to vector<8x128xf32>
    %165 = arith.mulf %164, %163 : vector<8x128xf32>
    %166 = arith.mulf %165, %163 : vector<8x128xf32>
    %167 = math.exp %166 : vector<8x128xf32>
    %c14 = arith.constant 14 : index
    %168 = memref.load %arg2[%c14] : memref<21xf32, #tpu.memory_space<smem>>
    %169 = vector.broadcast %168 : f32 to vector<8x128xf32>
    %170 = arith.mulf %167, %169 : vector<8x128xf32>
    %171 = arith.addf %161, %170 : vector<8x128xf32>
    %cst_39 = arith.constant 1.500000e+00 : f32
    %172 = vector.broadcast %cst_39 : f32 to vector<8x128xf32>
    %173 = arith.subf %20, %172 : vector<8x128xf32>
    %cst_40 = arith.constant -1.000000e+01 : f32
    %174 = vector.broadcast %cst_40 : f32 to vector<8x128xf32>
    %175 = arith.mulf %174, %173 : vector<8x128xf32>
    %176 = arith.mulf %175, %173 : vector<8x128xf32>
    %177 = math.exp %176 : vector<8x128xf32>
    %c15 = arith.constant 15 : index
    %178 = memref.load %arg2[%c15] : memref<21xf32, #tpu.memory_space<smem>>
    %179 = vector.broadcast %178 : f32 to vector<8x128xf32>
    %180 = arith.mulf %177, %179 : vector<8x128xf32>
    %181 = arith.addf %171, %180 : vector<8x128xf32>
    %cst_41 = arith.constant 1.600000e+00 : f32
    %182 = vector.broadcast %cst_41 : f32 to vector<8x128xf32>
    %183 = arith.subf %20, %182 : vector<8x128xf32>
    %cst_42 = arith.constant -1.000000e+01 : f32
    %184 = vector.broadcast %cst_42 : f32 to vector<8x128xf32>
    %185 = arith.mulf %184, %183 : vector<8x128xf32>
    %186 = arith.mulf %185, %183 : vector<8x128xf32>
    %187 = math.exp %186 : vector<8x128xf32>
    %c16 = arith.constant 16 : index
    %188 = memref.load %arg2[%c16] : memref<21xf32, #tpu.memory_space<smem>>
    %189 = vector.broadcast %188 : f32 to vector<8x128xf32>
    %190 = arith.mulf %187, %189 : vector<8x128xf32>
    %191 = arith.addf %181, %190 : vector<8x128xf32>
    %cst_43 = arith.constant 1.700000e+00 : f32
    %192 = vector.broadcast %cst_43 : f32 to vector<8x128xf32>
    %193 = arith.subf %20, %192 : vector<8x128xf32>
    %cst_44 = arith.constant -1.000000e+01 : f32
    %194 = vector.broadcast %cst_44 : f32 to vector<8x128xf32>
    %195 = arith.mulf %194, %193 : vector<8x128xf32>
    %196 = arith.mulf %195, %193 : vector<8x128xf32>
    %197 = math.exp %196 : vector<8x128xf32>
    %c17 = arith.constant 17 : index
    %198 = memref.load %arg2[%c17] : memref<21xf32, #tpu.memory_space<smem>>
    %199 = vector.broadcast %198 : f32 to vector<8x128xf32>
    %200 = arith.mulf %197, %199 : vector<8x128xf32>
    %201 = arith.addf %191, %200 : vector<8x128xf32>
    %cst_45 = arith.constant 1.800000e+00 : f32
    %202 = vector.broadcast %cst_45 : f32 to vector<8x128xf32>
    %203 = arith.subf %20, %202 : vector<8x128xf32>
    %cst_46 = arith.constant -1.000000e+01 : f32
    %204 = vector.broadcast %cst_46 : f32 to vector<8x128xf32>
    %205 = arith.mulf %204, %203 : vector<8x128xf32>
    %206 = arith.mulf %205, %203 : vector<8x128xf32>
    %207 = math.exp %206 : vector<8x128xf32>
    %c18 = arith.constant 18 : index
    %208 = memref.load %arg2[%c18] : memref<21xf32, #tpu.memory_space<smem>>
    %209 = vector.broadcast %208 : f32 to vector<8x128xf32>
    %210 = arith.mulf %207, %209 : vector<8x128xf32>
    %211 = arith.addf %201, %210 : vector<8x128xf32>
    %cst_47 = arith.constant 1.900000e+00 : f32
    %212 = vector.broadcast %cst_47 : f32 to vector<8x128xf32>
    %213 = arith.subf %20, %212 : vector<8x128xf32>
    %cst_48 = arith.constant -1.000000e+01 : f32
    %214 = vector.broadcast %cst_48 : f32 to vector<8x128xf32>
    %215 = arith.mulf %214, %213 : vector<8x128xf32>
    %216 = arith.mulf %215, %213 : vector<8x128xf32>
    %217 = math.exp %216 : vector<8x128xf32>
    %c19 = arith.constant 19 : index
    %218 = memref.load %arg2[%c19] : memref<21xf32, #tpu.memory_space<smem>>
    %219 = vector.broadcast %218 : f32 to vector<8x128xf32>
    %220 = arith.mulf %217, %219 : vector<8x128xf32>
    %221 = arith.addf %211, %220 : vector<8x128xf32>
    %cst_49 = arith.constant dense<0.000000e+00> : vector<128xf32>
    %222 = vector.multi_reduction <add>, %221, %cst_49 [0] : vector<8x128xf32> to vector<128xf32>
    %223 = vector.shape_cast %222 : vector<128xf32> to vector<1x128xf32>
    %c20 = arith.constant 20 : index
    %224 = memref.load %arg2[%c20] : memref<21xf32, #tpu.memory_space<smem>>
    %225 = vector.broadcast %224 : f32 to vector<1x128xf32>
    %226 = arith.addf %223, %225 : vector<1x128xf32>
    %c0_50 = arith.constant 0 : index
    %c0_51 = arith.constant 0 : index
    %227 = vector.load %arg3[%c0_50, %c0_51] : memref<1x128xf32, #tpu.memory_space<vmem>>, vector<1x128xf32>
    tpu.vector_store %arg3[%c0_50, %c0_51], %226 {strides = array<i32>} : memref<1x128xf32, #tpu.memory_space<vmem>>, vector<1x128xf32>,
    return
  }
  func.func @transform_0(%arg0: i32) -> (i32, i32, i32) {
    %c0_i32 = arith.constant 0 : i32
    %c0_i32_0 = arith.constant 0 : i32
    %c0_i32_1 = arith.constant 0 : i32
    return %c0_i32, %c0_i32_0, %arg0 : i32, i32, i32
  }
  func.func @transform_1(%arg0: i32) -> i32 {
    %c0_i32 = arith.constant 0 : i32
    %c0_i32_0 = arith.constant 0 : i32
    return %c0_i32 : i32
  }
  func.func @transform_2(%arg0: i32) -> (i32, i32) {
    %c0_i32 = arith.constant 0 : i32
    %c0_i32_0 = arith.constant 0 : i32
    return %c0_i32, %arg0 : i32, i32
  }
}

</mosaic_0001>

<bundles_post_ra>
// kernel: tpu_custom_call.1
= control target key start
LH: loop header
LB: loop body
LE: loop exit
PB: predicated region body
PF: predicated region fallthrough
CT: control target
= control target key end

     0   :  { %7 = vsyncpa [#allocation3], 0  ;;  %s542_s0 = inlined_call_operand.hbm [shape: f32[3,8,128], index: 0, kind: input, shape index: {}]   ;;  %s543_s1 = inlined_call_operand.vmem [shape: f32[21], index: 1, kind: input, shape index: {}]   ;;  %s544_s2 = inlined_call_operand.hbm [shape: f32[1,128], index: 2, kind: output, shape index: {}]  }
   0x1   :  { %8 = vsyncpa [#allocation5], 0 }
   0x2   :  { %9 = vsyncpa [#allocation4], 0  ;;  %s424_s9 = smov [#allocation2]   ;;  %s28_s13 = sshll.u32 %s543_s1, 4  ;;  %s29_s13 = int_to_ptr.vmem [resolvable:$true] %s28_s13 }
   0x3   :  { %s15_s10 = sshll.u32 %s424_s9, 4  ;;  %s362_s16 = scalar_lea.hbm %s542_s0, 384  ;;  %s16_s10 = int_to_ptr.vmem [resolvable:$true] %s15_s10 }
   0x4   :  { %p363_p0 = scmp.ne.s32.totalorder %s542_s0, %s362_s16  ;;  %p366_p1 = scmp.lt.u32.totalorder %s362_s16, %s542_s0 }
   0x6   :  { %p368_p2 = pnand %p366_p1, %p363_p0 }
   0x8   :  { %371 = shalt.err (!%p368_p2)
}
   0x9   :  { %s372_s21 = scalar_lea.vmem %s16_s10, 384  ;;  %p377_p4 = scmp.lt.s32.totalorder %s16_s10, %s16_s10 }
   0xa   :  { %p373_p3 = scmp.ne.s32.totalorder %s16_s10, %s372_s21  ;;  %p378_p5 = scmp.lt.s32.totalorder %s372_s21, %s372_s21 }
   0xc   :  { %p379_p6 = por %p378_p5, %p377_p4 }
   0xe   :  { %p380_p7 = pnand %p379_p6, %p373_p3 }
  0x10   :  { %383 = shalt.err (!%p380_p7)
}
  0x11   :  { %s425_s1 = smov 128   ;;  %s426_s22 = smov 8  }
  0x12   :  { %21 = dma.hbm_to_vmem [thread:$0]  %s542_s0, 384, %s16_s10, [#allocation3], %s425_s1, %s425_s1, %s426_s22  }
  0x13   :  { %s384_s25 = scalar_lea.vmem %s29_s13, 16  ;;  %p389_p9 = scmp.lt.s32.totalorder %s29_s13, %s29_s13 }
  0x14   :  { %p385_p8 = scmp.ne.s32.totalorder %s29_s13, %s384_s25  ;;  %p390_p10 = scmp.lt.s32.totalorder %s384_s25, %s384_s25 }
  0x16   :  { %p391_p11 = por %p390_p10, %p389_p9 }
  0x18   :  { %p392_p12 = pnand %p391_p11, %p385_p8 }
  0x1a   :  { %395 = shalt.err (!%p392_p12)
}
  0x1b   :  { %s427_s26 = smov [#allocation6]  }
  0x1c   :  { %31 = dma.vmem_to_smem %s29_s13, 16, %s427_s26, [#allocation5]  }
  0x1d   :  { %418 = dma.done.wait [#allocation3], 384  }
  0x1e   :  { %419 = vsyncadd [#allocation3], 4294966912 }
  0x1f   :  { %420 = dma.done.wait [#allocation5], 16  }
  0x20   :  { %421 = vsyncadd [#allocation5], 4294967280 }
  0x21   :  { %38 = sfence }
  0x22   :  { %v44_v0 = vlaneseq  ;;  %v39_v2 = vld [vmem:[#allocation2] sm:$0xff]  ;;  %v41_v3 = vld [vmem:[#allocation2 + $0x8] sm:$0xff]  ;;  %v43_v4 = vld [vmem:[#allocation2 + $0x10] sm:$0xff]  ;;  %s470_s0 = sld [smem:[#allocation6]]  ;;  %s472_s27 = sld [smem:[#allocation6 + $0x1]] }
  0x23   :  { %s474_s28 = sld [smem:[#allocation6 + $0x2]]  ;;  %s476_s29 = sld [smem:[#allocation6 + $0x3]] }
  0x24   :  { %v45_v1 = vshrl.u32 %v44_v0, 7  ;;  %s483_s30 = sld [smem:[#allocation6 + $0x4]]  ;;  %s486_s3 = sld [smem:[#allocation6 + $0x5]] }
  0x25   :  { %s489_s4 = sld [smem:[#allocation6 + $0x6]]  ;;  %s496_s5 = sld [smem:[#allocation6 + $0x7]] }
  0x26   :  { %v46_v5 = vsub.s32 0, %v45_v1  ;;  %s500_s6 = sld [smem:[#allocation6 + $0x8]]  ;;  %s504_s7 = sld [smem:[#allocation6 + $0x9]] }
  0x27   :  { %s508_s8 = sld [smem:[#allocation6 + $0xa]]  ;;  %s512_s9 = sld [smem:[#allocation6 + $0xb]] }
  0x28   :  { %v47_v6 = vrot.slane %v39_v2, %v46_v5  ;;  %v52_v7 = vrot.slane %v41_v3, %v46_v5  ;;  %v57_v8 = vrot.slane %v43_v4, %v46_v5  ;;  %s515_s10 = sld [smem:[#allocation6 + $0xc]]  ;;  %s518_s11 = sld [smem:[#allocation6 + $0xd]] }
  0x29   :  { %s521_s12 = sld [smem:[#allocation6 + $0xe]]  ;;  %s524_s13 = sld [smem:[#allocation6 + $0xf]] }
  0x2a   :  { %v48_v9 = vsub.f32 %v39_v2, %v47_v6  ;;  %v53_v10 = vsub.f32 %v41_v3, %v52_v7  ;;  %v58_v11 = vsub.f32 %v43_v4, %v57_v8  ;;  %v76_v2 = vstv %s470_s0  ;;  %s307_s14 = sld [smem:[#allocation6 + $0x10]]  ;;  %s309_s15 = sld [smem:[#allocation6 + $0x11]] }
  0x2b   :  { %s311_s16 = sld [smem:[#allocation6 + $0x12]]  ;;  %s313_s17 = sld [smem:[#allocation6 + $0x13]] }
  0x2c   :  { %v59_v12 = vmul.f32 %v48_v9, %v48_v9  ;;  %v60_v13 = vmul.f32 %v53_v10, %v53_v10  ;;  %v62_v14 = vmul.f32 %v58_v11, %v58_v11  ;;  %v85_v9 = vstv %s472_s27  ;;  %s314_s18 = sld [smem:[#allocation6 + $0x14]]  ;;  %s428_s19 = smov [#allocation7]  }
  0x2d   :  { %s266_s20 = sshll.u32 %s428_s19, 4  ;;  %s267_s20 = int_to_ptr.vmem [resolvable:$true] %s266_s20 }
  0x2e   :  { %v61_v15 = vadd.f32 %v60_v13, %v59_v12  ;;  %v94_v13 = vstv %s474_s28  ;;  %s396_s21 = scalar_lea.vmem %s267_s20, 16  ;;  %s400_s1 = scalar_lea.vmem %s267_s20, 32 }
  0x2f   :  { %p397_p13 = scmp.ne.s32.totalorder %s267_s20, %s396_s21  ;;  %p401_p0 = scmp.lt.s32.totalorder %s267_s20, %s267_s20 }
  0x30   :  { %v63_v16 = vadd.f32 %v62_v14, %v61_v15  ;;  %v103_v14 = vstv %s476_s29  ;;  %p402_p1 = scmp.lt.s32.totalorder %s400_s1, %s396_s21 }
  0x32   :  { %320 = vrsqrt.f32 %v63_v16  ;;  %vm66_vm0 = vcmp.eq.f32.partialorder %v63_v16, inf  ;;  %v69_v18 = vand.u32 2147483648, %v63_v16  ;;  %vm68_vm1 = vcmp.eq.f32.partialorder %v63_v16, 0.0  ;;  %p403_p2 = por %p402_p1, %p401_p0 }
  0x34   :  { %p404_p3 = pnand %p403_p2, %p397_p13 }
  0x3c   :  { %v321_v17 = vpop.eup %320 }
  0x3d   :  { %v65_v19 = vmul.f32 %v321_v17, %v63_v16 }
  0x3f   :  { %v67_v20 = vsel %vm66_vm0, %v63_v16, %v65_v19 }
  0x40   :  { %v459_v21 = vsel %vm68_vm1, %v69_v18, %v67_v20 }
  0x41   :  { %v71_v22 = vmul.f32 -10.0, %v459_v21  ;;  %v276_v23 = vadd.f32 -0.1, %v459_v21  ;;  %v278_v24 = vadd.f32 -0.2, %v459_v21  ;;  %v284_v25 = vadd.f32 -0.5, %v459_v21 }
  0x42   :  { %v280_v26 = vadd.f32 -0.3, %v459_v21  ;;  %v282_v27 = vadd.f32 -0.4, %v459_v21  ;;  %v286_v28 = vadd.f32 -0.6, %v459_v21 }
  0x43   :  { %v72_v29 = vmul.f32 %v71_v22, %v459_v21  ;;  %v80_v30 = vmul.f32 -10.0, %v276_v23  ;;  %v89_v31 = vmul.f32 -10.0, %v278_v24  ;;  %v116_v32 = vmul.f32 -10.0, %v284_v25 }
  0x44   :  { %v98_v33 = vmul.f32 -10.0, %v280_v26  ;;  %v107_v34 = vmul.f32 -10.0, %v282_v27  ;;  %v125_v35 = vmul.f32 -10.0, %v286_v28  ;;  %v288_v36 = vadd.f32 -0.7, %v459_v21 }
  0x45   :  { %v73_v37 = vmul.f32 1.442695, %v72_v29  ;;  %v81_v38 = vmul.f32 %v276_v23, %v80_v30  ;;  %v90_v39 = vmul.f32 %v278_v24, %v89_v31  ;;  %v117_v40 = vmul.f32 %v284_v25, %v116_v32 }
  0x46   :  { %v99_v41 = vmul.f32 %v280_v26, %v98_v33  ;;  %v108_v42 = vmul.f32 %v282_v27, %v107_v34  ;;  %v126_v43 = vmul.f32 %v286_v28, %v125_v35  ;;  %v134_v44 = vmul.f32 -10.0, %v288_v36 }
  0x47   :  { %322 = vpow2.f32 %v73_v37  ;;  %v82_v45 = vmul.f32 1.442695, %v81_v38  ;;  %v91_v46 = vmul.f32 1.442695, %v90_v39  ;;  %v118_v49 = vmul.f32 1.442695, %v117_v40 }
  0x48   :  { %v100_v47 = vmul.f32 1.442695, %v99_v41  ;;  %v109_v48 = vmul.f32 1.442695, %v108_v42  ;;  %v135_v50 = vmul.f32 %v288_v36, %v134_v44  ;;  %v290_v51 = vadd.f32 -0.8, %v459_v21 }
  0x49   :  { %324 = vpow2.f32 %v82_v45  ;;  %v292_v52 = vadd.f32 -0.9, %v459_v21  ;;  %v294_v53 = vadd.f32 -1.0, %v459_v21  ;;  %v127_v54 = vmul.f32 1.442695, %v126_v43 }
  0x4a   :  { %326 = vpow2.f32 %v91_v46  ;;  %v296_v55 = vadd.f32 -1.1, %v459_v21  ;;  %v298_v56 = vadd.f32 -1.2, %v459_v21  ;;  %v143_v57 = vmul.f32 -10.0, %v290_v51 }
  0x4b   :  { %328 = vpow2.f32 %v100_v47  ;;  %v152_v58 = vmul.f32 -10.0, %v292_v52  ;;  %v161_v59 = vmul.f32 -10.0, %v294_v53  ;;  %v300_v61 = vadd.f32 -1.3, %v459_v21 }
  0x4c   :  { %330 = vpow2.f32 %v109_v48  ;;  %v170_v60 = vmul.f32 -10.0, %v296_v55  ;;  %v136_v62 = vmul.f32 1.442695, %v135_v50  ;;  %v144_v63 = vmul.f32 %v290_v51, %v143_v57 }
  0x4d   :  { %332 = vpow2.f32 %v118_v49  ;;  %v153_v0 = vmul.f32 %v292_v52, %v152_v58  ;;  %v179_v1 = vmul.f32 -10.0, %v298_v56  ;;  %v162_v4 = vmul.f32 %v294_v53, %v161_v59 }
  0x4e   :  { %334 = vpow2.f32 %v127_v54  ;;  %v145_v3 = vmul.f32 1.442695, %v144_v63  ;;  %v171_v5 = vmul.f32 %v296_v55, %v170_v60  ;;  %v188_v6 = vmul.f32 -10.0, %v300_v61 }
  0x4f   :  { %v302_v7 = vadd.f32 -1.4, %v459_v21  ;;  %336 = vpow2.f32 %v136_v62  ;;  %v154_v10 = vmul.f32 1.442695, %v153_v0  ;;  %v304_v11 = vadd.f32 -1.5, %v459_v21 }
  0x50   :  { %v180_v15 = vmul.f32 %v298_v56, %v179_v1  ;;  %338 = vpow2.f32 %v145_v3  ;;  %v163_v17 = vmul.f32 1.442695, %v162_v4  ;;  %v306_v19 = vadd.f32 -1.6, %v459_v21 }
  0x51   :  { %v323_v8 = vpop.eup %322  ;;  %v197_v18 = vmul.f32 -10.0, %v302_v7  ;;  %v112_v23 = vstv %s483_s30  ;;  %v172_v24 = vmul.f32 1.442695, %v171_v5  ;;  %v189_v25 = vmul.f32 %v300_v61, %v188_v6 }
  0x52   :  { %v77_v12 = vmul.f32 %v323_v8, %v76_v2  ;;  %340 = vpow2.f32 %v154_v10  ;;  %v206_v28 = vmul.f32 -10.0, %v304_v11  ;;  %v308_v29 = vadd.f32 -1.7, %v459_v21 }
  0x53   :  { %v325_v16 = vpop.eup %324  ;;  %v121_v33 = vstv %s486_s3  ;;  %v181_v34 = vmul.f32 1.442695, %v180_v15  ;;  %342 = vpow2.f32 %v163_v17  ;;  %v198_v36 = vmul.f32 %v302_v7, %v197_v18 }
  0x54   :  { %v327_v20 = vpop.eup %326  ;;  %v86_v22 = vmul.f32 %v325_v16, %v85_v9  ;;  %v215_v37 = vmul.f32 -10.0, %v306_v19  ;;  %v310_v38 = vadd.f32 -1.8, %v459_v21  ;;  %v130_v41 = vstv %s489_s4 }
  0x55   :  { %v329_v26 = vpop.eup %328  ;;  %v95_v27 = vmul.f32 %v327_v20, %v94_v13  ;;  %v190_v42 = vmul.f32 1.442695, %v189_v25  ;;  %344 = vpow2.f32 %v172_v24  ;;  %v207_v44 = vmul.f32 %v304_v11, %v206_v28 }
  0x56   :  { %v331_v30 = vpop.eup %330  ;;  %v87_v31 = vadd.f32 %v86_v22, %v77_v12  ;;  %v104_v32 = vmul.f32 %v329_v26, %v103_v14  ;;  %v224_v45 = vmul.f32 -10.0, %v308_v29  ;;  %v312_v46 = vadd.f32 -1.9, %v459_v21 }
  0x57   :  { %v333_v35 = vpop.eup %332  ;;  %v113_v40 = vmul.f32 %v331_v30, %v112_v23  ;;  %v139_v49 = vstv %s496_s5  ;;  %346 = vpow2.f32 %v181_v34  ;;  %v199_v51 = vmul.f32 1.442695, %v198_v36 }
  0x58   :  { %v96_v39 = vadd.f32 %v95_v27, %v87_v31  ;;  %v335_v43 = vpop.eup %334  ;;  %v122_v48 = vmul.f32 %v333_v35, %v121_v33  ;;  %v216_v52 = vmul.f32 %v306_v19, %v215_v37  ;;  %v233_v53 = vmul.f32 -10.0, %v310_v38 }
  0x59   :  { %v337_v50 = vpop.eup %336  ;;  %v131_v55 = vmul.f32 %v335_v43, %v130_v41  ;;  %v148_v56 = vstv %s500_s6  ;;  %348 = vpow2.f32 %v190_v42  ;;  %v208_v21 = vmul.f32 1.442695, %v207_v44 }
  0x5a   :  { %v105_v47 = vadd.f32 %v104_v32, %v96_v39  ;;  %v339_v57 = vpop.eup %338  ;;  %v225_v58 = vmul.f32 %v308_v29, %v224_v45  ;;  %v242_v59 = vmul.f32 -10.0, %v312_v46  ;;  %v140_v61 = vmul.f32 %v337_v50, %v139_v49 }
  0x5b   :  { %v157_v63 = vstv %s504_s7  ;;  %350 = vpow2.f32 %v199_v51  ;;  %v217_v0 = vmul.f32 1.442695, %v216_v52  ;;  %v234_v1 = vmul.f32 %v310_v38, %v233_v53 }
  0x5c   :  { %v114_v54 = vadd.f32 %v113_v40, %v105_v47  ;;  %v341_v62 = vpop.eup %340  ;;  %v149_v3 = vmul.f32 %v339_v57, %v148_v56  ;;  %v166_v5 = vstv %s508_s8  ;;  %352 = vpow2.f32 %v208_v21 }
  0x5d   :  { %v343_v4 = vpop.eup %342  ;;  %v226_v6 = vmul.f32 1.442695, %v225_v58  ;;  %v243_v7 = vmul.f32 %v312_v46, %v242_v59  ;;  %v158_v9 = vmul.f32 %v341_v62, %v157_v63  ;;  %v175_v11 = vstv %s512_s9 }
  0x5e   :  { %v123_v60 = vadd.f32 %v122_v48, %v114_v54  ;;  %354 = vpow2.f32 %v217_v0  ;;  %v235_v12 = vmul.f32 1.442695, %v234_v1  ;;  %v167_v14 = vmul.f32 %v343_v4, %v166_v5 }
  0x5f   :  { %v345_v10 = vpop.eup %344  ;;  %v184_v16 = vstv %s515_s10  ;;  %356 = vpow2.f32 %v226_v6  ;;  %v244_v17 = vmul.f32 1.442695, %v243_v7  ;;  %v193_v22 = vstv %s518_s11 }
  0x60   :  { %v132_v2 = vadd.f32 %v131_v55, %v123_v60  ;;  %v176_v19 = vmul.f32 %v345_v10, %v175_v11  ;;  %358 = vpow2.f32 %v235_v12  ;;  %v202_v26 = vstv %s521_s12 }
  0x61   :  { %v347_v15 = vpop.eup %346  ;;  %360 = vpow2.f32 %v244_v17  ;;  %v211_v30 = vstv %s524_s13  ;;  %v220_v34 = vstv %s307_s14  ;;  %v229_v38 = vstv %s309_s15 }
  0x62   :  { %v141_v8 = vadd.f32 %v140_v61, %v132_v2  ;;  %v185_v24 = vmul.f32 %v347_v15, %v184_v16  ;;  %v238_v42 = vstv %s311_s16  ;;  %v247_v46 = vstv %s313_s17 }
  0x63   :  { %v349_v20 = vpop.eup %348  ;;  %v257_v21 = vstv %s314_s18 }
  0x64   :  { %v150_v13 = vadd.f32 %v149_v3, %v141_v8  ;;  %v194_v28 = vmul.f32 %v349_v20, %v193_v22 }
  0x65   :  { %v351_v25 = vpop.eup %350 }
  0x66   :  { %v159_v18 = vadd.f32 %v158_v9, %v150_v13  ;;  %v353_v29 = vpop.eup %352  ;;  %v203_v32 = vmul.f32 %v351_v25, %v202_v26 }
  0x67   :  { %v212_v36 = vmul.f32 %v353_v29, %v211_v30 }
  0x68   :  { %v168_v23 = vadd.f32 %v167_v14, %v159_v18  ;;  %v355_v33 = vpop.eup %354 }
  0x69   :  { %v357_v37 = vpop.eup %356  ;;  %v221_v40 = vmul.f32 %v355_v33, %v220_v34 }
  0x6a   :  { %v177_v27 = vadd.f32 %v176_v19, %v168_v23  ;;  %v359_v41 = vpop.eup %358  ;;  %v230_v44 = vmul.f32 %v357_v37, %v229_v38 }
  0x6b   :  { %v361_v45 = vpop.eup %360  ;;  %v239_v48 = vmul.f32 %v359_v41, %v238_v42 }
  0x6c   :  { %v186_v31 = vadd.f32 %v185_v24, %v177_v27  ;;  %v248_v50 = vmul.f32 %v361_v45, %v247_v46 }
  0x6e   :  { %v195_v35 = vadd.f32 %v194_v28, %v186_v31 }
  0x70   :  { %v204_v39 = vadd.f32 %v203_v32, %v195_v35 }
  0x72   :  { %v213_v43 = vadd.f32 %v212_v36, %v204_v39 }
  0x74   :  { %v222_v47 = vadd.f32 %v221_v40, %v213_v43 }
  0x76   :  { %v231_v49 = vadd.f32 %v230_v44, %v222_v47 }
  0x78   :  { %v240_v51 = vadd.f32 %v239_v48, %v231_v49 }
  0x7a   :  { %v249_v52 = vadd.f32 %v248_v50, %v240_v51 }
  0x7c   :  { %v250_v53 = vrot.slane %v249_v52, 4 }
  0x7e   :  { %v251_v54 = vadd.f32 %v250_v53, %v249_v52 }
  0x80   :  { %v252_v55 = vrot.slane %v251_v54, 2 }
  0x82   :  { %v253_v56 = vadd.f32 %v252_v55, %v251_v54 }
  0x84   :  { %v254_v57 = vrot.slane %v253_v56, 1 }
  0x86   :  { %v255_v58 = vadd.f32 %v254_v57, %v253_v56 }
  0x88   :  { %v258_v59 = vadd.f32 %v257_v21, %v255_v58 }
  0x8a   :  { %259 = vst [vmem:[#allocation7] sm:$0x1] %v258_v59 }
  0x8b   :  { %407 = shalt.err (!%p404_p3)
}
  0x8c   :  { %s408_s24 = scalar_lea.hbm %s544_s2, 16 }
  0x8d   :  { %p409_p4 = scmp.ne.s32.totalorder %s544_s2, %s408_s24  ;;  %p412_p5 = scmp.lt.u32.totalorder %s408_s24, %s544_s2 }
  0x8f   :  { %p414_p6 = pnand %p412_p5, %p409_p4 }
  0x91   :  { %417 = shalt.err (!%p414_p6)
}
  0x92   :  { %269 = dma.vmem_to_hbm [thread:$0]  %s267_s20, 16, %s544_s2, [#allocation4]  }
  0x93   :  { %422 = dma.done.wait [#allocation4], 16  }
  0x94   :  { %423 = vsyncadd [#allocation4], 4294967280 }
  0x95   :  { %273 = vsyncpa [#allocation3], 1 }
  0x96   :  { %274 = vsyncpa [#allocation4], 1 }
  0x97   :  { %275 = vsyncpa [#allocation5], 1 }

</bundles_post_ra>
